<compile_context>
chip_gen: v7x
topology: tpu7x:2x2x1
jax: 0.10.0
libtpu: 0.0.40
codegen_flags: <defaults>
</compile_context>

<pallas_src>
import jax
import jax.numpy as jnp
from jax.experimental import pallas as pl
from jax.experimental.pallas import tpu as pltpu


def _cdiv(a, b):
    return -(-a // b)


def _round_up(x, m):
    return ((x + m - 1) // m) * m


def _default_block_b(E):
    # ~2 MiB of f32 activation bytes per input per buffer; clamp to [256, 4096].
    rows = (2 << 20) // max(4 * E, 1)
    rows = _round_up(max(rows, 1), 128)
    return int(min(max(rows, 256), 4096))


def _auto_hidden_act_dtype(matmul_dtype):
    """bf16 tanh on v6e/v7x (bf16 EUP, ~2x rate); f32 elsewhere (v5e EUP has no bf16)."""
    if jnp.dtype(matmul_dtype) != jnp.dtype(jnp.bfloat16):
        return jnp.dtype(jnp.float32)
    try:
        kind = jax.devices()[0].device_kind.lower()
    except Exception:
        return jnp.dtype(jnp.float32)
    if ("v6" in kind) or ("v7" in kind) or ("tpu7" in kind):
        return jnp.dtype(jnp.bfloat16)
    return jnp.dtype(jnp.float32)


def _resident_spec(shape, single_buffer):
    """Constant-index (resident) block.  single_buffer=True halves its VMEM
    footprint (block index never changes, so one buffer suffices)."""
    index_map = lambda i: (0,) * len(shape)
    if single_buffer:
        return pl.BlockSpec(shape, index_map, pipeline_mode=pl.Buffered(1))
    return pl.BlockSpec(shape, index_map)


def _make_kernel(matmul_dtype, act_dtype):
    def kernel(q_ref, d1_ref, d2_ref,
               w1q_ref, w1d_ref, b1_ref,
               w2a_ref, w2b_ref, b2_ref,
               out_ref):
        md = matmul_dtype
        w1d = w1d_ref[...]                       # resident (E, E) MXU operand
        b1 = b1_ref[...]                         # (1, E) f32 epilogue row

        # Hoisted shared query matmul: one MXU push, reused for both docs.
        # In-kernel cast rides in idle VPU slots (no wrapper HBM pass).
        qw = jnp.dot(q_ref[...].astype(md), w1q_ref[...],
                     preferred_element_type=jnp.float32)        # (bb, E) f32

        def _sigmoid_f32(x):
            # sigmoid(x) = 0.5*(1 + tanh(0.5x)): one EUP push per element.
            return 0.5 * (jnp.tanh(0.5 * x) + 1.0)

        def _hidden_head(d_ref, w2_row):
            # Per-doc: matmul -> hidden sigmoid -> head partial.  Keeping this
            # per-doc halves peak live f32 temporaries (qw + one dw + one rep).
            dw = jnp.dot(d_ref[...].astype(md), w1d,
                         preferred_element_type=jnp.float32)    # (bb, E) f32
            pre = 0.5 * (qw + dw + b1)
            # hidden-layer tanh in act_dtype (bf16 on v6e/v7x EUP); head stays f32
            t = jnp.tanh(pre.astype(act_dtype)).astype(jnp.float32)
            rep = 0.5 * (t + 1.0)                               # sigmoid(qw+dw+b1)
            # N=1 compare head: VPU multiply + XLU lane reduce (no matmul).
            return jnp.sum(rep * w2_row, axis=-1)               # (bb,)

        logit = (_hidden_head(d1_ref, w2a_ref[...])
                 + _hidden_head(d2_ref, w2b_ref[...])
                 + b2_ref[0, 0])                                # (bb,)

        # Lane-dense store: (1, 1, bb) block == full trailing dims of the output.
        out_ref[...] = _sigmoid_f32(logit)[None, None, :]

    return kernel


def pairwise_ranker(query, doc1, doc2, w1, b1, w2, b2,
                    *, block_b=None, matmul_dtype=jnp.bfloat16,
                    hidden_act_dtype=None):
    """query/doc1/doc2: (B, E); w1: (2E, E); b1: (E,); w2: (2E, 1); b2: (1,).

    Weights are stored as (in, out), i.e. the transpose of PyTorch's Linear
    weight.  Returns (B, 1) float32, matching the PyTorch module.
    """
    B, E = query.shape
    md = jnp.dtype(matmul_dtype)
    act_dtype = (jnp.dtype(hidden_act_dtype) if hidden_act_dtype is not None
                 else _auto_hidden_act_dtype(md))

    # ---- batch tiling: bytes-driven block size, >= 2 balanced tiles for v7x ----
    block_b_cap = _default_block_b(E) if block_b is None else int(block_b)
    if B <= 256:
        bb = B                              # block == full dim -> no (8,128) issue
    else:
        n_tiles = max(2, _cdiv(B, block_b_cap))
        if n_tiles % 2:
            n_tiles += 1                    # balance across v7x's 2 TensorCores
        bb = _round_up(_cdiv(B, n_tiles), 8)
    grid_b = _cdiv(B, bb)                   # edge blocks allowed; no padding pass

    # ---- parameter prep (small, one-time; activations are untouched) ----
    w1q = w1[:E].astype(md)                             # (E, E) MXU operand
    w1d = w1[E:].astype(md)                             # (E, E) MXU operand
    b1_row = b1.reshape(1, E).astype(jnp.float32)       # f32 epilogue
    w2a_row = w2[:E].reshape(1, E).astype(jnp.float32)  # VPU row vectors
    w2b_row = w2[E:].reshape(1, E).astype(jnp.float32)
    b2_scl = b2.reshape(1, 1).astype(jnp.float32)       # SMEM scalar

    # ---- specs ----
    act_spec = pl.BlockSpec((bb, E), lambda i: (i, 0))
    single_buffer_w = E >= 1024             # halve resident-weight VMEM (v7x: 64 MiB)
    w_spec = _resident_spec((E, E), single_buffer_w)
    row_spec = _resident_spec((1, E), False)
    out_spec = pl.BlockSpec((1, 1, bb), lambda i: (i, 0, 0))

    # ---- VMEM budget from the actual tile sizes (not a blanket constant) ----
    in_item = jnp.dtype(query.dtype).itemsize
    bytes_needed = (
        3 * bb * E * in_item * 2                                   # q/d1/d2, 2-buffered
        + 2 * E * E * md.itemsize * (1 if single_buffer_w else 2)  # W1 halves
        + 3 * E * 4 * 2 + 2 * bb * 4                               # bias/w2 rows, out
        + 4 * bb * E * 4                                           # f32 temporaries
    )
    vmem_limit = max(16 << 20, min(int(bytes_needed * 1.25) + (2 << 20), 56 << 20))

    out = pl.pallas_call(
        _make_kernel(md, act_dtype),
        out_shape=jax.ShapeDtypeStruct((grid_b, 1, bb), jnp.float32),
        grid=(grid_b,),
        in_specs=[
            act_spec, act_spec, act_spec,                       # q, d1, d2 tiles
            w_spec, w_spec,                                     # W1 split (resident)
            row_spec,                                           # b1 row
            row_spec, row_spec,                                 # W2 split as rows
            pl.BlockSpec(memory_space=pltpu.MemorySpace.SMEM),  # b2 scalar
        ],
        out_specs=out_spec,
        compiler_params=pltpu.CompilerParams(
            dimension_semantics=("parallel",),                  # megacore-shard batch
            vmem_limit_bytes=int(vmem_limit),
        ),
    )(query, doc1, doc2, w1q, w1d, b1_row, w2a_row, w2b_row, b2_scl)

    # Tail rows (grid_b*bb - B) are garbage from edge blocks: sliced off, never used.
    return out.reshape(grid_b * bb)[:B].reshape(B, 1)


def pairwise_ranker_ref(query, doc1, doc2, w1, b1, w2, b2):
    rep1 = jax.nn.sigmoid(jnp.concatenate([query, doc1], axis=1) @ w1 + b1)
    rep2 = jax.nn.sigmoid(jnp.concatenate([query, doc2], axis=1) @ w1 + b1)
    return jax.nn.sigmoid(jnp.concatenate([rep1, rep2], axis=1) @ w2 + b2)


if __name__ == "__main__":
    B, E = 8, 32  # batch, embedding_size
    key = jax.random.PRNGKey(0)
    kq, k1, k2, kw1, kb1, kw2, kb2 = jax.random.split(key, 7)

    query = jax.random.normal(kq, (B, E), dtype=jnp.float32)
    doc1 = jax.random.normal(k1, (B, E), dtype=jnp.float32)
    doc2 = jax.random.normal(k2, (B, E), dtype=jnp.float32)

    # Deterministic synthetic parameters (W stored as (in, out) == torch W.T).
    w1 = jax.random.normal(kw1, (2 * E, E), dtype=jnp.float32) * 0.1
    b1 = jax.random.normal(kb1, (E,), dtype=jnp.float32) * 0.1
    w2 = jax.random.normal(kw2, (2 * E, 1), dtype=jnp.float32) * 0.1
    b2 = jax.random.normal(kb2, (1,), dtype=jnp.float32) * 0.1

    ref = pairwise_ranker_ref(query, doc1, doc2, w1, b1, w2, b2)

    # 1) exact-dtype path (f32 matmuls, f32 tanh): tight tolerance.
    out_f32 = pairwise_ranker(query, doc1, doc2, w1, b1, w2, b2,
                              matmul_dtype=jnp.float32)
    jax.block_until_ready(out_f32)
    assert out_f32.shape == (B, 1)
    assert jnp.allclose(out_f32, ref, atol=1e-5, rtol=1e-5)

    # 2) default fast path (bf16 MXU operands; bf16 tanh on v6e/v7x; f32 epilogue).
    out_fast = pairwise_ranker(query, doc1, doc2, w1, b1, w2, b2)
    jax.block_until_ready(out_fast)
    assert jnp.allclose(out_fast, ref, atol=2e-2, rtol=0)

    # 3) large-batch gridded path: cdiv grid, edge-block tail, 2 balanced tiles.
    Bl = 1030
    kq2, k12, k22 = jax.random.split(jax.random.PRNGKey(1), 3)
    qL = jax.random.normal(kq2, (Bl, E), dtype=jnp.float32)
    d1L = jax.random.normal(k12, (Bl, E), dtype=jnp.float32)
    d2L = jax.random.normal(k22, (Bl, E), dtype=jnp.float32)
    outL = pairwise_ranker(qL, d1L, d2L, w1, b1, w2, b2,
                           matmul_dtype=jnp.float32)
    jax.block_until_ready(outL)
    refL = pairwise_ranker_ref(qL, d1L, d2L, w1, b1, w2, b2)
    assert outL.shape == (Bl, 1)
    assert jnp.allclose(outL, refL, atol=1e-5, rtol=1e-5)

    print("KERNEL_OK")
</pallas_src>

<mosaic_0001>
module attributes {stable_mosaic.version = 11 : i64} {
  func.func @kernel(%arg0: i32, %arg1: memref<8x32xf32, #tpu.memory_space<vmem>>, %arg2: memref<8x32xf32, #tpu.memory_space<vmem>>, %arg3: memref<8x32xf32, #tpu.memory_space<vmem>>, %arg4: memref<32x32xf32, #tpu.memory_space<vmem>>, %arg5: memref<32x32xf32, #tpu.memory_space<vmem>>, %arg6: memref<1x32xf32, #tpu.memory_space<vmem>>, %arg7: memref<1x32xf32, #tpu.memory_space<vmem>>, %arg8: memref<1x32xf32, #tpu.memory_space<vmem>>, %arg9: memref<1x1xf32, #tpu.memory_space<smem>>, %arg10: memref<1x1x8xf32, #tpu.memory_space<vmem>>) attributes {dimension_semantics = [#tpu.dimension_semantics<parallel>], iteration_bounds = array<i64: 1>, scalar_prefetch = 0 : i64, scratch_operands = 0 : i64, tpu.core_type = #tpu.core_type<tc>, window_params = [{transform_indices = @transform_0, window_bounds = array<i64: 8, 32>}, {transform_indices = @transform_1, window_bounds = array<i64: 8, 32>}, {transform_indices = @transform_2, window_bounds = array<i64: 8, 32>}, {pipeline_mode = #tpu.pipeline_mode<synchronous>, transform_indices = @transform_3, window_bounds = array<i64: 32, 32>}, {pipeline_mode = #tpu.pipeline_mode<synchronous>, transform_indices = @transform_4, window_bounds = array<i64: 32, 32>}, {pipeline_mode = #tpu.pipeline_mode<synchronous>, transform_indices = @transform_5, window_bounds = array<i64: 1, 32>}, {pipeline_mode = #tpu.pipeline_mode<synchronous>, transform_indices = @transform_6, window_bounds = array<i64: 1, 32>}, {pipeline_mode = #tpu.pipeline_mode<synchronous>, transform_indices = @transform_7, window_bounds = array<i64: 1, 32>}, {transform_indices = @transform_8, window_bounds = array<i64: 1, 1>}, {transform_indices = @transform_9, window_bounds = array<i64: 1, 1, 8>}]} {
    %c0 = arith.constant 0 : index
    %c0_0 = arith.constant 0 : index
    %0 = vector.load %arg5[%c0, %c0_0] : memref<32x32xf32, #tpu.memory_space<vmem>>, vector<32x32xf32>
    %c0_1 = arith.constant 0 : index
    %c0_2 = arith.constant 0 : index
    %1 = vector.load %arg6[%c0_1, %c0_2] : memref<1x32xf32, #tpu.memory_space<vmem>>, vector<1x32xf32>
    %c0_3 = arith.constant 0 : index
    %c0_4 = arith.constant 0 : index
    %2 = vector.load %arg1[%c0_3, %c0_4] : memref<8x32xf32, #tpu.memory_space<vmem>>, vector<8x32xf32>
    %c0_5 = arith.constant 0 : index
    %c0_6 = arith.constant 0 : index
    %3 = vector.load %arg4[%c0_5, %c0_6] : memref<32x32xf32, #tpu.memory_space<vmem>>, vector<32x32xf32>
    %cst = arith.constant dense<0.000000e+00> : vector<8x32xf32>
    %4 = tpu.matmul %2, %3, %cst {dimension_numbers = #tpu.dot_dimension_numbers<[1], [0], [0], [1], [0, 0, 1, 1], [], []>} : vector<8x32xf32>, vector<32x32xf32>, vector<8x32xf32> -> vector<8x32xf32>
    %c0_7 = arith.constant 0 : index
    %c0_8 = arith.constant 0 : index
    %5 = vector.load %arg7[%c0_7, %c0_8] : memref<1x32xf32, #tpu.memory_space<vmem>>, vector<1x32xf32>
    %c0_9 = arith.constant 0 : index
    %c0_10 = arith.constant 0 : index
    %6 = vector.load %arg2[%c0_9, %c0_10] : memref<8x32xf32, #tpu.memory_space<vmem>>, vector<8x32xf32>
    %cst_11 = arith.constant dense<0.000000e+00> : vector<8x32xf32>
    %7 = tpu.matmul %6, %0, %cst_11 {dimension_numbers = #tpu.dot_dimension_numbers<[1], [0], [0], [1], [0, 0, 1, 1], [], []>} : vector<8x32xf32>, vector<32x32xf32>, vector<8x32xf32> -> vector<8x32xf32>
    %8 = arith.addf %4, %7 : vector<8x32xf32>
    %9 = vector.broadcast %1 : vector<1x32xf32> to vector<8x32xf32>
    %10 = arith.addf %8, %9 : vector<8x32xf32>
    %cst_12 = arith.constant 5.000000e-01 : f32
    %11 = vector.broadcast %cst_12 : f32 to vector<8x32xf32>
    %12 = arith.mulf %11, %10 : vector<8x32xf32>
    %13 = math.tanh %12 : vector<8x32xf32>
    %cst_13 = arith.constant 1.000000e+00 : f32
    %14 = vector.broadcast %cst_13 : f32 to vector<8x32xf32>
    %15 = arith.addf %13, %14 : vector<8x32xf32>
    %cst_14 = arith.constant 5.000000e-01 : f32
    %16 = vector.broadcast %cst_14 : f32 to vector<8x32xf32>
    %17 = arith.mulf %16, %15 : vector<8x32xf32>
    %18 = vector.broadcast %5 : vector<1x32xf32> to vector<8x32xf32>
    %19 = arith.mulf %17, %18 : vector<8x32xf32>
    %cst_15 = arith.constant dense<0.000000e+00> : vector<8xf32>
    %20 = vector.multi_reduction <add>, %19, %cst_15 [1] : vector<8x32xf32> to vector<8xf32>
    %c0_16 = arith.constant 0 : index
    %c0_17 = arith.constant 0 : index
    %21 = vector.load %arg8[%c0_16, %c0_17] : memref<1x32xf32, #tpu.memory_space<vmem>>, vector<1x32xf32>
    %c0_18 = arith.constant 0 : index
    %c0_19 = arith.constant 0 : index
    %22 = vector.load %arg3[%c0_18, %c0_19] : memref<8x32xf32, #tpu.memory_space<vmem>>, vector<8x32xf32>
    %cst_20 = arith.constant dense<0.000000e+00> : vector<8x32xf32>
    %23 = tpu.matmul %22, %0, %cst_20 {dimension_numbers = #tpu.dot_dimension_numbers<[1], [0], [0], [1], [0, 0, 1, 1], [], []>} : vector<8x32xf32>, vector<32x32xf32>, vector<8x32xf32> -> vector<8x32xf32>
    %24 = arith.addf %4, %23 : vector<8x32xf32>
    %25 = vector.broadcast %1 : vector<1x32xf32> to vector<8x32xf32>
    %26 = arith.addf %24, %25 : vector<8x32xf32>
    %cst_21 = arith.constant 5.000000e-01 : f32
    %27 = vector.broadcast %cst_21 : f32 to vector<8x32xf32>
    %28 = arith.mulf %27, %26 : vector<8x32xf32>
    %29 = math.tanh %28 : vector<8x32xf32>
    %cst_22 = arith.constant 1.000000e+00 : f32
    %30 = vector.broadcast %cst_22 : f32 to vector<8x32xf32>
    %31 = arith.addf %29, %30 : vector<8x32xf32>
    %cst_23 = arith.constant 5.000000e-01 : f32
    %32 = vector.broadcast %cst_23 : f32 to vector<8x32xf32>
    %33 = arith.mulf %32, %31 : vector<8x32xf32>
    %34 = vector.broadcast %21 : vector<1x32xf32> to vector<8x32xf32>
    %35 = arith.mulf %33, %34 : vector<8x32xf32>
    %cst_24 = arith.constant dense<0.000000e+00> : vector<8xf32>
    %36 = vector.multi_reduction <add>, %35, %cst_24 [1] : vector<8x32xf32> to vector<8xf32>
    %37 = arith.addf %20, %36 : vector<8xf32>
    %c0_25 = arith.constant 0 : index
    %c0_26 = arith.constant 0 : index
    %38 = memref.load %arg9[%c0_25, %c0_26] : memref<1x1xf32, #tpu.memory_space<smem>>
    %39 = vector.broadcast %38 : f32 to vector<8xf32>
    %40 = arith.addf %37, %39 : vector<8xf32>
    %cst_27 = arith.constant 5.000000e-01 : f32
    %41 = vector.broadcast %cst_27 : f32 to vector<8xf32>
    %42 = arith.mulf %41, %40 : vector<8xf32>
    %43 = math.tanh %42 : vector<8xf32>
    %cst_28 = arith.constant 1.000000e+00 : f32
    %44 = vector.broadcast %cst_28 : f32 to vector<8xf32>
    %45 = arith.addf %43, %44 : vector<8xf32>
    %cst_29 = arith.constant 5.000000e-01 : f32
    %46 = vector.broadcast %cst_29 : f32 to vector<8xf32>
    %47 = arith.mulf %46, %45 : vector<8xf32>
    %48 = vector.shape_cast %47 : vector<8xf32> to vector<1x1x8xf32>
    %c0_30 = arith.constant 0 : index
    %c0_31 = arith.constant 0 : index
    %c0_32 = arith.constant 0 : index
    %49 = vector.load %arg10[%c0_30, %c0_31, %c0_32] : memref<1x1x8xf32, #tpu.memory_space<vmem>>, vector<1x1x8xf32>
    tpu.vector_store %arg10[%c0_30, %c0_31, %c0_32], %48 {strides = array<i32>} : memref<1x1x8xf32, #tpu.memory_space<vmem>>, vector<1x1x8xf32>,
    return
  }
  func.func @transform_0(%arg0: i32) -> (i32, i32) {
    %c0_i32 = arith.constant 0 : i32
    %c0_i32_0 = arith.constant 0 : i32
    return %arg0, %c0_i32 : i32, i32
  }
  func.func @transform_1(%arg0: i32) -> (i32, i32) {
    %c0_i32 = arith.constant 0 : i32
    %c0_i32_0 = arith.constant 0 : i32
    return %arg0, %c0_i32 : i32, i32
  }
  func.func @transform_2(%arg0: i32) -> (i32, i32) {
    %c0_i32 = arith.constant 0 : i32
    %c0_i32_0 = arith.constant 0 : i32
    return %arg0, %c0_i32 : i32, i32
  }
  func.func @transform_3(%arg0: i32) -> (i32, i32) {
    %c0_i32 = arith.constant 0 : i32
    %c0_i32_0 = arith.constant 0 : i32
    %c0_i32_1 = arith.constant 0 : i32
    return %c0_i32, %c0_i32_0 : i32, i32
  }
  func.func @transform_4(%arg0: i32) -> (i32, i32) {
    %c0_i32 = arith.constant 0 : i32
    %c0_i32_0 = arith.constant 0 : i32
    %c0_i32_1 = arith.constant 0 : i32
    return %c0_i32, %c0_i32_0 : i32, i32
  }
  func.func @transform_5(%arg0: i32) -> (i32, i32) {
    %c0_i32 = arith.constant 0 : i32
    %c0_i32_0 = arith.constant 0 : i32
    %c0_i32_1 = arith.constant 0 : i32
    return %c0_i32, %c0_i32_0 : i32, i32
  }
  func.func @transform_6(%arg0: i32) -> (i32, i32) {
    %c0_i32 = arith.constant 0 : i32
    %c0_i32_0 = arith.constant 0 : i32
    %c0_i32_1 = arith.constant 0 : i32
    return %c0_i32, %c0_i32_0 : i32, i32
  }
  func.func @transform_7(%arg0: i32) -> (i32, i32) {
    %c0_i32 = arith.constant 0 : i32
    %c0_i32_0 = arith.constant 0 : i32
    %c0_i32_1 = arith.constant 0 : i32
    return %c0_i32, %c0_i32_0 : i32, i32
  }
  func.func @transform_8(%arg0: i32) -> (i32, i32) {
    %c0_i32 = arith.constant 0 : i32
    %c0_i32_0 = arith.constant 0 : i32
    %c0_i32_1 = arith.constant 0 : i32
    return %c0_i32, %c0_i32_0 : i32, i32
  }
  func.func @transform_9(%arg0: i32) -> (i32, i32, i32) {
    %c0_i32 = arith.constant 0 : i32
    %c0_i32_0 = arith.constant 0 : i32
    %c0_i32_1 = arith.constant 0 : i32
    return %arg0, %c0_i32, %c0_i32_0 : i32, i32, i32
  }
}

</mosaic_0001>

<bundles_post_ra>
// kernel: tpu_custom_call.1
= control target key start
LH: loop header
LB: loop body
LE: loop exit
PB: predicated region body
PF: predicated region fallthrough
CT: control target
= control target key end

     0   :  { %15 = vsyncpa [#allocation4], 0  ;;  %s741_s0 = inlined_call_operand.hbm [shape: f32[8,32], index: 0, kind: input, shape index: {}]   ;;  %s742_s1 = inlined_call_operand.hbm [shape: f32[8,32], index: 1, kind: input, shape index: {}]   ;;  %s743_s2 = inlined_call_operand.vmem [shape: f32[8,32], index: 2, kind: input, shape index: {}]   ;;  %s744_s3 = inlined_call_operand.hbm [shape: f32[32,32], index: 3, kind: input, shape index: {}]   ;;  %s745_s4 = inlined_call_operand.hbm [shape: f32[32,32], index: 4, kind: input, shape index: {}]   ;;  %s746_s5 = inlined_call_operand.vmem [shape: f32[1,32], index: 5, kind: input, shape index: {}]   ;;  %s747_s6 = inlined_call_operand.vmem [shape: f32[1,32], index: 6, kind: input, shape index: {}]   ;;  %s748_s7 = inlined_call_operand.vmem [shape: f32[1,32], index: 7, kind: input, shape index: {}]   ;;  %s749_s8 = inlined_call_operand.<no memory space> [shape: f32[1,1], index: 8, kind: input, shape index: {}]   ;;  %s750_s9 = inlined_call_operand.hbm [shape: f32[1,1,8], index: 9, kind: output, shape index: {}]  }
   0x1   :  { %16 = vsyncpa [#allocation7], 0 }
   0x2   :  { %17 = vsyncpa [#allocation10], 0 }
   0x3   :  { %18 = vsyncpa [#allocation5], 0  ;;  %s598_s30 = smov [#allocation6]   ;;  %s599_s11 = smov [#allocation3]  }
   0x4   :  { %s35_s10 = sshll.u32 %s598_s30, 4  ;;  %s25_s12 = sshll.u32 %s599_s11, 4  ;;  %s36_s10 = int_to_ptr.vmem [resolvable:$true] %s35_s10  ;;  %s26_s12 = int_to_ptr.vmem [resolvable:$true] %s25_s12 }
   0x5   :  { %s480_s15 = scalar_lea.hbm %s742_s1, 128 }
   0x6   :  { %p481_p0 = scmp.ne.s32.totalorder %s742_s1, %s480_s15  ;;  %p484_p1 = scmp.lt.u32.totalorder %s480_s15, %s742_s1 }
   0x8   :  { %p486_p2 = pnand %p484_p1, %p481_p0 }
   0xa   :  { %489 = shalt.err (!%p486_p2)
}
   0xb   :  { %s490_s20 = scalar_lea.vmem %s36_s10, 128  ;;  %p495_p4 = scmp.lt.s32.totalorder %s36_s10, %s36_s10 }
   0xc   :  { %p491_p3 = scmp.ne.s32.totalorder %s36_s10, %s490_s20  ;;  %p496_p5 = scmp.lt.s32.totalorder %s490_s20, %s490_s20 }
   0xe   :  { %p497_p6 = por %p496_p5, %p495_p4 }
  0x10   :  { %p498_p7 = pnand %p497_p6, %p491_p3 }
  0x12   :  { %501 = shalt.err (!%p498_p7)
}
  0x13   :  { %38 = dma.hbm_to_vmem [thread:$0]  %s742_s1, 128, %s36_s10, [#allocation7]  }
  0x14   :  { %s502_s25 = scalar_lea.hbm %s741_s0, 128 }
  0x15   :  { %p503_p8 = scmp.ne.s32.totalorder %s741_s0, %s502_s25  ;;  %p506_p9 = scmp.lt.u32.totalorder %s502_s25, %s741_s0 }
  0x17   :  { %p508_p10 = pnand %p506_p9, %p503_p8 }
  0x19   :  { %511 = shalt.err (!%p508_p10)
}
  0x1a   :  { %s512_s30 = scalar_lea.vmem %s26_s12, 128  ;;  %p517_p12 = scmp.lt.s32.totalorder %s26_s12, %s26_s12 }
  0x1b   :  { %p513_p11 = scmp.ne.s32.totalorder %s26_s12, %s512_s30  ;;  %p518_p13 = scmp.lt.s32.totalorder %s512_s30, %s512_s30 }
  0x1d   :  { %p519_p0 = por %p518_p13, %p517_p12 }
  0x1f   :  { %p520_p1 = pnand %p519_p0, %p513_p11 }
  0x21   :  { %523 = shalt.err (!%p520_p1)
}
  0x22   :  { %28 = dma.hbm_to_vmem [thread:$0]  %s741_s0, 128, %s26_s12, [#allocation4]  }
  0x23   :  { %s600_s11 = smov [#allocation8]   ;;  %s524_s16 = scalar_lea.hbm %s744_s3, 512 }
  0x24   :  { %s46_s13 = sshll.u32 %s600_s11, 4  ;;  %p525_p2 = scmp.ne.s32.totalorder %s744_s3, %s524_s16  ;;  %s47_s13 = int_to_ptr.vmem [resolvable:$true] %s46_s13 }
  0x25   :  { %p528_p3 = scmp.lt.u32.totalorder %s524_s16, %s744_s3 }
  0x27   :  { %p530_p4 = pnand %p528_p3, %p525_p2 }
  0x29   :  { %533 = shalt.err (!%p530_p4)
}
  0x2a   :  { %s534_s21 = scalar_lea.vmem %s47_s13, 512  ;;  %p539_p6 = scmp.lt.s32.totalorder %s47_s13, %s47_s13 }
  0x2b   :  { %p535_p5 = scmp.ne.s32.totalorder %s47_s13, %s534_s21  ;;  %p540_p7 = scmp.lt.s32.totalorder %s534_s21, %s534_s21 }
  0x2d   :  { %p541_p8 = por %p540_p7, %p539_p6 }
  0x2f   :  { %p542_p9 = pnand %p541_p8, %p535_p5 }
  0x31   :  { %545 = shalt.err (!%p542_p9)
}
  0x32   :  { %s601_s0 = smov 128   ;;  %s602_s12 = smov 8  }
  0x33   :  { %52 = dma.hbm_to_vmem [thread:$0]  %s744_s3, 512, %s47_s13, [#allocation7], %s601_s0, %s601_s0, %s602_s12  }
  0x34   :  { %s603_s24 = smov [#allocation9]   ;;  %s546_s28 = scalar_lea.hbm %s745_s4, 512 }
  0x35   :  { %s58_s25 = sshll.u32 %s603_s24, 4  ;;  %p547_p10 = scmp.ne.s32.totalorder %s745_s4, %s546_s28  ;;  %s59_s25 = int_to_ptr.vmem [resolvable:$true] %s58_s25 }
  0x36   :  { %p550_p11 = scmp.lt.u32.totalorder %s546_s28, %s745_s4 }
  0x38   :  { %p552_p12 = pnand %p550_p11, %p547_p10 }
  0x3a   :  { %555 = shalt.err (!%p552_p12)
}
  0x3b   :  { %s556_s11 = scalar_lea.vmem %s59_s25, 512  ;;  %p561_p0 = scmp.lt.s32.totalorder %s59_s25, %s59_s25 }
  0x3c   :  { %p557_p13 = scmp.ne.s32.totalorder %s59_s25, %s556_s11  ;;  %p562_p1 = scmp.lt.s32.totalorder %s556_s11, %s556_s11 }
  0x3e   :  { %p563_p2 = por %p562_p1, %p561_p0 }
  0x40   :  { %p564_p3 = pnand %p563_p2, %p557_p13 }
  0x42   :  { %567 = shalt.err (!%p564_p3)
}
  0x43   :  { %64 = dma.hbm_to_vmem [thread:$0]  %s745_s4, 512, %s59_s25, [#allocation10], %s601_s0, %s601_s0, %s602_s12  }
  0x44   :  { %590 = dma.done.wait [#allocation4], 128  }
  0x45   :  { %591 = vsyncadd [#allocation4], 4294967168 }
  0x46   :  { %592 = dma.done.wait [#allocation7], 640  }
  0x47   :  { %593 = vsyncadd [#allocation7], 4294966656 }
  0x48   :  { %594 = dma.done.wait [#allocation10], 512  }
  0x49   :  { %595 = vsyncadd [#allocation10], 4294966784  ;;  %v604_v0 = vmov 0.0|0.0   ;;  %vm605_vm0 = vmmov 0   ;;  %v606_v1 = vmov 0.0   ;;  %v91_v2 = vld [vmem:[#allocation8] sm:$0xff]  ;;  %v359_v43 = vstv %s749_s8 }
  0x4a   :  { %446 = vmatprep.subr.bf16.mxu0 %v604_v0  ;;  %452 = vmatprep.subr.bf16.mxu1 %v604_v0  ;;  %v92_v3 = vld [vmem:[#allocation8 + $0x8] sm:$0xff]  ;;  %v85_v4 = vld [vmem:[#allocation9] sm:$0xff]  ;;  %v93_v7 = vld [vmem:[#allocation8 + $0x10] sm:$0xff]  ;;  %vm95_vm1 = vcmask 261120   ;;  %v366_v48 = vlaneseq  ;;  %vm373_vm2 = vcmask 57344  }
  0x4b   :  { %421 = vmatprep.mubr.msk.f32.mxu0 %vm605_vm0, %v606_v1  ;;  %432 = vmatprep.mubr.msk.f32.mxu1 %vm605_vm0, %v606_v1  ;;  %v447_v5 = vpack.c.bf16 %v92_v3, %v91_v2  ;;  %v86_v6 = vld [vmem:[#allocation9 + $0x8] sm:$0xff]  ;;  %v94_v8 = vld [vmem:[#allocation8 + $0x18] sm:$0xff]  ;;  %v87_v10 = vld [vmem:[#allocation9 + $0x10] sm:$0xff] }
  0x4c   :  { %v453_v9 = vpack.c.bf16 %v86_v6, %v85_v4  ;;  %v88_v11 = vld [vmem:[#allocation9 + $0x18] sm:$0xff]  ;;  %v450_v12 = vpack.c.bf16 %v94_v8, %v93_v7  ;;  %v90_v14 = vld [vmem:[#allocation3] sm:$0xff]  ;;  %v367_v49 = vand.u32 127, %v366_v48  ;;  %v369_v50 = vshrl.u32 %v366_v48, 7 }
  0x4d   :  { %448 = vmatpush3.bf16.msra.mxu0 %v447_v5  ;;  %v456_v13 = vpack.c.bf16 %v88_v11, %v87_v10  ;;  %v170_v15 = vld [vmem:[#allocation6] sm:$0xff]  ;;  %v267_v16 = vld [vmem:[%s743_s2] sm:$0xff] }
  0x4e   :  { %454 = vmatpush3.bf16.msra.mxu1 %v453_v9  ;;  %449 = vmatprep.subr.bf16.mxu0 %v604_v0  ;;  %v394_v19 = vld [vmem:[%s746_s5] ss:$0 sm:$0xff]  ;;  %v370_v53 = vsub.s32 %v367_v49, %v369_v50 }
  0x4f   :  { %455 = vmatprep.subr.bf16.mxu1 %v604_v0  ;;  %v395_v32 = vld [vmem:[%s747_s6] ss:$0 sm:$0xff]  ;;  %s607_s6 = smov [#allocation11]  }
  0x50   :  { %v397_v38 = vld [vmem:[%s748_s7] ss:$0 sm:$0xff]  ;;  %s381_s7 = sshll.u32 %s607_s6, 4  ;;  %s382_s7 = int_to_ptr.vmem [resolvable:$true] %s381_s7 }
  0x51   :  { %451 = vmatpush3.bf16.msra.mxu0 %v450_v12  ;;  %s568_s21 = scalar_lea.vmem %s382_s7, 16  ;;  %s572_s8 = scalar_lea.vmem %s382_s7, 32 }
  0x52   :  { %457 = vmatpush3.bf16.msra.mxu1 %v456_v13  ;;  %458 = vmatprep.subr.bf16.mxu0 %v604_v0  ;;  %p569_p4 = scmp.ne.s32.totalorder %s382_s7, %s568_s21  ;;  %p573_p5 = scmp.lt.s32.totalorder %s382_s7, %s382_s7 }
  0x53   :  { %p574_p6 = scmp.lt.s32.totalorder %s572_s8, %s568_s21 }
  0x54   :  { %422 = vmatmul.mubr.msk.f32.vlgmr.msra.gmra.mrb[0].mxu0 %vm95_vm1, %v90_v14 }
  0x55   :  { %433 = vmatmul.mubr.msk.f32.vlgmr.msra.gmra.mrb[0].mxu1 %vm95_vm1, %v170_v15  ;;  %460 = vmatpush3.bf16.msra.mxu0 %v453_v9  ;;  %p575_p7 = por %p574_p6, %p573_p5 }
  0x56   :  { %461 = vmatprep.subr.bf16.mxu0 %v604_v0  ;;  %443 = vmatprep.mubr.msk.f32.mxu0 %vm605_vm0, %v606_v1 }
  0x57   :  { %p576_p8 = pnand %p575_p7, %p569_p4 }
  0x59   :  { %463 = vmatpush3.bf16.msra.mxu0 %v456_v13 }
  0x5c   :  { %444 = vmatmul.mubr.msk.f32.vlgmr.msra.gmra.mrb[2].mxu0 %vm95_vm1, %v267_v16 }
 0x127   :  { %v165_v17 = vpop.f32.mrb[0].mxu0 }
 0x128   :  { %v423_v18 = vpop.f32.mrb[1].mxu0  ;;  %v240_v20 = vpop.f32.mrb[0].mxu1 }
 0x129   :  { %v244_v21 = vadd.f32 %v240_v20, %v165_v17  ;;  %v434_v22 = vpop.f32.mrb[1].mxu1 }
 0x12b   :  { %v251_v23 = vadd.f32 %v394_v19, %v244_v21 }
 0x12d   :  { %v252_v24 = vmul.f32 0.5, %v251_v23 }
 0x12f   :  { %474 = vtanh.f32 %v252_v24  ;;  %v337_v25 = vpop.f32.mrb[2].mxu0 }
 0x130   :  { %v341_v26 = vadd.f32 %v337_v25, %v165_v17  ;;  %v445_v27 = vpop.f32.mrb[3].mxu0 }
 0x132   :  { %v342_v28 = vadd.f32 %v394_v19, %v341_v26 }
 0x134   :  { %v343_v29 = vmul.f32 0.5, %v342_v28 }
 0x136   :  { %476 = vtanh.f32 %v343_v29 }
 0x139   :  { %v475_v30 = vpop.eup %474 }
 0x13a   :  { %v254_v31 = vadd.f32 1.0, %v475_v30 }
 0x13c   :  { %v255_v33 = vmul.f32 0.5, %v254_v31 }
 0x13e   :  { %v262_v34 = vmul.f32 %v395_v32, %v255_v33 }
 0x140   :  { %v477_v35 = vpop.eup %476  ;;  %v263_v36 = vsel %vm95_vm1, %v262_v34, 0.0 }
 0x141   :  { %264 = vadd.xlane.f32.xlu0 %v263_v36  ;;  %v345_v37 = vadd.f32 1.0, %v477_v35 }
 0x143   :  { %v346_v39 = vmul.f32 0.5, %v345_v37 }
 0x145   :  { %v353_v40 = vmul.f32 %v397_v38, %v346_v39 }
 0x147   :  { %v354_v41 = vsel %vm95_vm1, %v353_v40, 0.0 }
 0x148   :  { %355 = vadd.xlane.f32.xlu0 %v354_v41 }
 0x1ce   :  { %v265_v42 = vpop.xlane.xlu0 %264 }
 0x1d5   :  { %v356_v44 = vpop.xlane.xlu0 %355 }
 0x1d6   :  { %v357_v45 = vadd.f32 %v356_v44, %v265_v42 }
 0x1d8   :  { %v360_v46 = vadd.f32 %v359_v43, %v357_v45 }
 0x1da   :  { %v361_v47 = vmul.f32 0.5, %v360_v46 }
 0x1dc   :  { %478 = vtanh.f32 %v361_v47 }
 0x1e6   :  { %v479_v51 = vpop.eup %478 }
 0x1e7   :  { %v363_v52 = vadd.f32 1.0, %v479_v51 }
 0x1e9   :  { %v364_v54 = vmul.f32 0.5, %v363_v52 }
 0x1eb   :  { %v371_v55 = vrot.slane %v364_v54, %v370_v53 }
 0x1ed   :  { %374 = vst.msk [vmem:[#allocation11] sm:$0x1] %vm373_vm2, %v371_v55 }
 0x1ee   :  { %579 = shalt.err (!%p576_p8)
}
 0x1ef   :  { %s580_s22 = scalar_lea.hbm %s750_s9, 16 }
 0x1f0   :  { %p581_p9 = scmp.ne.s32.totalorder %s750_s9, %s580_s22  ;;  %p584_p10 = scmp.lt.u32.totalorder %s580_s22, %s750_s9 }
 0x1f2   :  { %p586_p11 = pnand %p584_p10, %p581_p9 }
 0x1f4   :  { %589 = shalt.err (!%p586_p11)
}
 0x1f5   :  { %384 = dma.vmem_to_hbm [thread:$0]  %s382_s7, 16, %s750_s9, [#allocation5]  }
 0x1f6   :  { %596 = dma.done.wait [#allocation5], 16  }
 0x1f7   :  { %597 = vsyncadd [#allocation5], 4294967280 }
 0x1f8   :  { %388 = vsyncpa [#allocation4], 1 }
 0x1f9   :  { %389 = vsyncpa [#allocation7], 1 }
 0x1fa   :  { %390 = vsyncpa [#allocation10], 1 }
 0x1fb   :  { %391 = vsyncpa [#allocation5], 1 }

</bundles_post_ra>
